<compile_context>
chip_gen: v5e
topology: v5e:2x2
jax: 0.10.0
libtpu: 0.0.40
codegen_flags: <defaults>
</compile_context>

<pallas_src>
import functools

import jax
import jax.numpy as jnp
from jax.experimental import pallas as pl
from jax.experimental.pallas import tpu as pltpu

_LANE = 128        # TPU lane width (last dim)
_ROW_GRANULE = 16  # bf16 packs 16 sublanes per vreg -> 16-row batch granule


def _round_up(n: int, m: int) -> int:
    return (n + m - 1) // m * m


def _pad2(a, rows, cols):
    return jnp.pad(a, ((0, rows - a.shape[0]), (0, cols - a.shape[1])))


def _mlp_kernel(x_ref, w1_ref, b1_ref, w2_ref, b2_ref, w3_ref, b3_ref, o_ref):
    # fc1 + relu : f32 matmul (K = input_dim is tiny -> negligible MXU cost,
    # tighter accuracy than bf16), f32 bias/relu epilogue on the VPU.
    h1 = jnp.dot(x_ref[...], w1_ref[...], preferred_element_type=jnp.float32)
    h1 = jnp.maximum(h1 + b1_ref[...], 0.0)

    # d1: dropout -> identity in eval mode.
    # TODO(synk): training-mode dropout (pltpu.prng_seed + prng_random_bits mask) not implemented.

    # fc2 + relu : bf16 MXU inputs, f32 accumulate, f32 epilogue.
    h2 = jnp.dot(h1.astype(w2_ref.dtype), w2_ref[...], preferred_element_type=jnp.float32)
    h2 = jnp.maximum(h2 + b2_ref[...], 0.0)

    # d2: dropout -> identity in eval mode.

    # out (logits, no activation); lane-dense bf16 store (padded to 128 cols).
    logits = jnp.dot(h2.astype(w3_ref.dtype), w3_ref[...], preferred_element_type=jnp.float32)
    o_ref[...] = (logits + b3_ref[...]).astype(o_ref.dtype)


def prepare_mlp_params(w1, b1, w2, b2, w3, b3):
    """One-time parameter prep (padding + dtype casts), hoisted out of the
    per-call forward path. Zero padding keeps extra rows/cols mathematically
    inert (padded bias entries are 0 -> padded logit columns are 0)."""
    input_dim, hidden1 = w1.shape
    hidden2 = w2.shape[1]
    n_classes = w3.shape[1]

    d_h1 = _round_up(hidden1, _LANE)
    d_h2 = _round_up(hidden2, _LANE)
    d_out = _round_up(n_classes, _LANE)

    # fc1 stays f32 (matches the f32 x tile); fc2 / out weights go bf16 for the MXU.
    w1_p = _pad2(w1, input_dim, d_h1).astype(jnp.float32)
    w2_p = _pad2(w2, d_h1, d_h2).astype(jnp.bfloat16)
    w3_p = _pad2(w3, d_h2, d_out).astype(jnp.bfloat16)
    # biases stay f32 (epilogue is f32 on the VPU).
    b1_p = _pad2(b1.reshape(1, -1), 1, d_h1).astype(jnp.float32)
    b2_p = _pad2(b2.reshape(1, -1), 1, d_h2).astype(jnp.float32)
    b3_p = _pad2(b3.reshape(1, -1), 1, d_out).astype(jnp.float32)
    return (w1_p, b1_p, w2_p, b2_p, w3_p, b3_p)


@functools.partial(jax.jit, static_argnames=("n_classes", "tm_max"))
def mlp_forward(x, params, *, n_classes, tm_max=512):
    w1_p, b1_p, w2_p, b2_p, w3_p, b3_p = params
    batch, input_dim = x.shape
    d_h1 = w1_p.shape[1]
    d_h2 = w2_p.shape[1]
    d_out = w3_p.shape[1]

    # --- batch tiling: 16-row granule, big tiles, >=2 tiles when possible ---
    m_min = _round_up(batch, _ROW_GRANULE)
    tm = min(tm_max, m_min)
    # v7x megacore: with a single tile one TensorCore idles; split into two
    # tiles whenever the (padded) batch has at least two row granules.
    if pl.cdiv(m_min, tm) == 1 and m_min >= 2 * _ROW_GRANULE:
        tm = _round_up(pl.cdiv(m_min, 2), _ROW_GRANULE)
    m = _round_up(m_min, tm)

    # Only row-padding of x (no dtype cast, no lane pad): the x BlockSpec's last
    # dim equals the full array dim, so the (8,128) constraint is satisfied and
    # no wider bf16 copy of x is ever written to HBM.
    x_p = x if m == batch else jnp.pad(x, ((0, m - batch), (0, 0)))

    grid = (m // tm,)

    out_padded = pl.pallas_call(
        _mlp_kernel,
        # bf16 output halves the largest HBM stream (padded logits writeback).
        out_shape=jax.ShapeDtypeStruct((m, d_out), jnp.bfloat16),
        grid=grid,
        in_specs=[
            # activation tile: marches down the batch axis (auto double-buffered).
            pl.BlockSpec((tm, input_dim), lambda i: (i, 0)),
            # weights / biases: constant index_map -> fetched once, VMEM-resident.
            pl.BlockSpec((input_dim, d_h1), lambda i: (0, 0)),
            pl.BlockSpec((1, d_h1), lambda i: (0, 0)),
            pl.BlockSpec((d_h1, d_h2), lambda i: (0, 0)),
            pl.BlockSpec((1, d_h2), lambda i: (0, 0)),
            pl.BlockSpec((d_h2, d_out), lambda i: (0, 0)),
            pl.BlockSpec((1, d_out), lambda i: (0, 0)),
        ],
        out_specs=pl.BlockSpec((tm, d_out), lambda i: (i, 0)),
        compiler_params=pltpu.CompilerParams(
            # batch axis is independent -> shard across the 2 TensorCores on v7x.
            dimension_semantics=("parallel",),
            # VMEM at TM=512: x tile 64 KiB f32 x2, out tile 128 KiB bf16 x2,
            # weights <100 KiB resident -> far below every generation's scoped
            # default (incl. v7x's 32 MiB). Re-derive + set vmem_limit_bytes only
            # if hidden dims are scaled up (shrink TM before weight residency).
        ),
    )(x_p, w1_p, b1_p, w2_p, b2_p, w3_p, b3_p)

    # strip batch + lane padding; cast the tiny real slice back to f32.
    return out_padded[:batch, :n_classes].astype(jnp.float32)


def _reference(x, w1, b1, w2, b2, w3, b3):
    h1 = jnp.maximum(x @ w1 + b1, 0.0)
    h2 = jnp.maximum(h1 @ w2 + b2, 0.0)
    return h2 @ w3 + b3


if __name__ == "__main__":
    # Small, module-consistent shapes:
    # _MLP(input_dim=32, hidden1=64, hidden2=32, dropout, n_classes=8)
    batch = 8
    input_dim = 32
    hidden1 = 64
    hidden2 = 32
    n_classes = 8

    key = jax.random.PRNGKey(0)
    kx, k1, k2, k3, kb1, kb2, kb3 = jax.random.split(key, 7)

    x = jax.random.normal(kx, (batch, input_dim), dtype=jnp.float32)

    # Deterministic parameter init (uniform like PyTorch's default Linear init).
    def linear_init(kw, kb, fan_in, fan_out):
        bound = 1.0 / jnp.sqrt(fan_in)
        w = jax.random.uniform(kw, (fan_in, fan_out), minval=-bound, maxval=bound, dtype=jnp.float32)
        b = jax.random.uniform(kb, (fan_out,), minval=-bound, maxval=bound, dtype=jnp.float32)
        return w, b

    w1, b1 = linear_init(k1, kb1, input_dim, hidden1)
    w2, b2 = linear_init(k2, kb2, hidden1, hidden2)
    w3, b3 = linear_init(k3, kb3, hidden2, n_classes)

    # One-time parameter prep (hoisted out of the per-call forward path).
    params = prepare_mlp_params(w1, b1, w2, b2, w3, b3)
    params = jax.tree_util.tree_map(jax.block_until_ready, params)

    out = mlp_forward(x, params, n_classes=n_classes)
    out = jax.block_until_ready(out)

    ref = _reference(x, w1, b1, w2, b2, w3, b3)
    assert out.shape == (batch, n_classes), out.shape
    # fc2/out use bf16 MXU inputs + bf16 logit store (f32 accumulate everywhere)
    # -> loosen tolerance vs the all-f32 reference.
    assert jnp.allclose(out, ref, atol=3e-2, rtol=3e-2), "mismatch vs reference"

    print("KERNEL_OK")
</pallas_src>

<mosaic_0001>
module attributes {stable_mosaic.version = 11 : i64} {
  func.func @_mlp_kernel(%arg0: i32, %arg1: memref<16x32xf32, #tpu.memory_space<vmem>>, %arg2: memref<32x128xf32, #tpu.memory_space<vmem>>, %arg3: memref<1x128xf32, #tpu.memory_space<vmem>>, %arg4: memref<128x128xbf16, #tpu.memory_space<vmem>>, %arg5: memref<1x128xf32, #tpu.memory_space<vmem>>, %arg6: memref<128x128xbf16, #tpu.memory_space<vmem>>, %arg7: memref<1x128xf32, #tpu.memory_space<vmem>>, %arg8: memref<16x128xbf16, #tpu.memory_space<vmem>>) attributes {dimension_semantics = [#tpu.dimension_semantics<parallel>], iteration_bounds = array<i64: 1>, scalar_prefetch = 0 : i64, scratch_operands = 0 : i64, tpu.core_type = #tpu.core_type<tc>, window_params = [{transform_indices = @transform_0, window_bounds = array<i64: 16, 32>}, {pipeline_mode = #tpu.pipeline_mode<synchronous>, transform_indices = @transform_1, window_bounds = array<i64: 32, 128>}, {pipeline_mode = #tpu.pipeline_mode<synchronous>, transform_indices = @transform_2, window_bounds = array<i64: 1, 128>}, {pipeline_mode = #tpu.pipeline_mode<synchronous>, transform_indices = @transform_3, window_bounds = array<i64: 128, 128>}, {pipeline_mode = #tpu.pipeline_mode<synchronous>, transform_indices = @transform_4, window_bounds = array<i64: 1, 128>}, {pipeline_mode = #tpu.pipeline_mode<synchronous>, transform_indices = @transform_5, window_bounds = array<i64: 128, 128>}, {pipeline_mode = #tpu.pipeline_mode<synchronous>, transform_indices = @transform_6, window_bounds = array<i64: 1, 128>}, {transform_indices = @transform_7, window_bounds = array<i64: 16, 128>}]} {
    %c0 = arith.constant 0 : index
    %c0_0 = arith.constant 0 : index
    %0 = vector.load %arg1[%c0, %c0_0] : memref<16x32xf32, #tpu.memory_space<vmem>>, vector<16x32xf32>
    %c0_1 = arith.constant 0 : index
    %c0_2 = arith.constant 0 : index
    %1 = vector.load %arg2[%c0_1, %c0_2] : memref<32x128xf32, #tpu.memory_space<vmem>>, vector<32x128xf32>
    %cst = arith.constant dense<0.000000e+00> : vector<16x128xf32>
    %2 = tpu.matmul %0, %1, %cst {dimension_numbers = #tpu.dot_dimension_numbers<[1], [0], [0], [1], [0, 0, 1, 1], [], []>} : vector<16x32xf32>, vector<32x128xf32>, vector<16x128xf32> -> vector<16x128xf32>
    %c0_3 = arith.constant 0 : index
    %c0_4 = arith.constant 0 : index
    %3 = vector.load %arg3[%c0_3, %c0_4] : memref<1x128xf32, #tpu.memory_space<vmem>>, vector<1x128xf32>
    %4 = vector.broadcast %3 : vector<1x128xf32> to vector<16x128xf32>
    %5 = arith.addf %2, %4 : vector<16x128xf32>
    %cst_5 = arith.constant 0.000000e+00 : f32
    %6 = vector.broadcast %cst_5 : f32 to vector<16x128xf32>
    %7 = arith.maximumf %5, %6 : vector<16x128xf32>
    %8 = arith.truncf %7 : vector<16x128xf32> to vector<16x128xbf16>
    %c0_6 = arith.constant 0 : index
    %c0_7 = arith.constant 0 : index
    %9 = vector.load %arg4[%c0_6, %c0_7] : memref<128x128xbf16, #tpu.memory_space<vmem>>, vector<128x128xbf16>
    %cst_8 = arith.constant dense<0.000000e+00> : vector<16x128xf32>
    %10 = tpu.matmul %8, %9, %cst_8 {dimension_numbers = #tpu.dot_dimension_numbers<[1], [0], [0], [1], [0, 0, 1, 1], [], []>} : vector<16x128xbf16>, vector<128x128xbf16>, vector<16x128xf32> -> vector<16x128xf32>
    %c0_9 = arith.constant 0 : index
    %c0_10 = arith.constant 0 : index
    %11 = vector.load %arg5[%c0_9, %c0_10] : memref<1x128xf32, #tpu.memory_space<vmem>>, vector<1x128xf32>
    %12 = vector.broadcast %11 : vector<1x128xf32> to vector<16x128xf32>
    %13 = arith.addf %10, %12 : vector<16x128xf32>
    %cst_11 = arith.constant 0.000000e+00 : f32
    %14 = vector.broadcast %cst_11 : f32 to vector<16x128xf32>
    %15 = arith.maximumf %13, %14 : vector<16x128xf32>
    %16 = arith.truncf %15 : vector<16x128xf32> to vector<16x128xbf16>
    %c0_12 = arith.constant 0 : index
    %c0_13 = arith.constant 0 : index
    %17 = vector.load %arg6[%c0_12, %c0_13] : memref<128x128xbf16, #tpu.memory_space<vmem>>, vector<128x128xbf16>
    %cst_14 = arith.constant dense<0.000000e+00> : vector<16x128xf32>
    %18 = tpu.matmul %16, %17, %cst_14 {dimension_numbers = #tpu.dot_dimension_numbers<[1], [0], [0], [1], [0, 0, 1, 1], [], []>} : vector<16x128xbf16>, vector<128x128xbf16>, vector<16x128xf32> -> vector<16x128xf32>
    %c0_15 = arith.constant 0 : index
    %c0_16 = arith.constant 0 : index
    %19 = vector.load %arg7[%c0_15, %c0_16] : memref<1x128xf32, #tpu.memory_space<vmem>>, vector<1x128xf32>
    %20 = vector.broadcast %19 : vector<1x128xf32> to vector<16x128xf32>
    %21 = arith.addf %18, %20 : vector<16x128xf32>
    %22 = arith.truncf %21 : vector<16x128xf32> to vector<16x128xbf16>
    %c0_17 = arith.constant 0 : index
    %c0_18 = arith.constant 0 : index
    %23 = vector.load %arg8[%c0_17, %c0_18] : memref<16x128xbf16, #tpu.memory_space<vmem>>, vector<16x128xbf16>
    tpu.vector_store %arg8[%c0_17, %c0_18], %22 {strides = array<i32>} : memref<16x128xbf16, #tpu.memory_space<vmem>>, vector<16x128xbf16>,
    return
  }
  func.func @transform_0(%arg0: i32) -> (i32, i32) {
    %c0_i32 = arith.constant 0 : i32
    %c0_i32_0 = arith.constant 0 : i32
    return %arg0, %c0_i32 : i32, i32
  }
  func.func @transform_1(%arg0: i32) -> (i32, i32) {
    %c0_i32 = arith.constant 0 : i32
    %c0_i32_0 = arith.constant 0 : i32
    %c0_i32_1 = arith.constant 0 : i32
    return %c0_i32, %c0_i32_0 : i32, i32
  }
  func.func @transform_2(%arg0: i32) -> (i32, i32) {
    %c0_i32 = arith.constant 0 : i32
    %c0_i32_0 = arith.constant 0 : i32
    %c0_i32_1 = arith.constant 0 : i32
    return %c0_i32, %c0_i32_0 : i32, i32
  }
  func.func @transform_3(%arg0: i32) -> (i32, i32) {
    %c0_i32 = arith.constant 0 : i32
    %c0_i32_0 = arith.constant 0 : i32
    %c0_i32_1 = arith.constant 0 : i32
    return %c0_i32, %c0_i32_0 : i32, i32
  }
  func.func @transform_4(%arg0: i32) -> (i32, i32) {
    %c0_i32 = arith.constant 0 : i32
    %c0_i32_0 = arith.constant 0 : i32
    %c0_i32_1 = arith.constant 0 : i32
    return %c0_i32, %c0_i32_0 : i32, i32
  }
  func.func @transform_5(%arg0: i32) -> (i32, i32) {
    %c0_i32 = arith.constant 0 : i32
    %c0_i32_0 = arith.constant 0 : i32
    %c0_i32_1 = arith.constant 0 : i32
    return %c0_i32, %c0_i32_0 : i32, i32
  }
  func.func @transform_6(%arg0: i32) -> (i32, i32) {
    %c0_i32 = arith.constant 0 : i32
    %c0_i32_0 = arith.constant 0 : i32
    %c0_i32_1 = arith.constant 0 : i32
    return %c0_i32, %c0_i32_0 : i32, i32
  }
  func.func @transform_7(%arg0: i32) -> (i32, i32) {
    %c0_i32 = arith.constant 0 : i32
    %c0_i32_0 = arith.constant 0 : i32
    return %arg0, %c0_i32 : i32, i32
  }
}

</mosaic_0001>

<bundles_post_ra>
// kernel: mlp_forward.1
= control target key start
LH: loop header
LB: loop body
LE: loop exit
PB: predicated region body
PF: predicated region fallthrough
CT: control target
= control target key end

     0   :  { %12 = vsyncpa [#allocation3], 0  ;;  %s540_s0 = inlined_call_operand.vmem [shape: f32[16,32], index: 0, kind: input, shape index: {}]   ;;  %s541_s1 = inlined_call_operand.hbm [shape: f32[32,128], index: 1, kind: input, shape index: {}]   ;;  %s542_s2 = inlined_call_operand.vmem [shape: f32[1,128], index: 2, kind: input, shape index: {}]   ;;  %s543_s3 = inlined_call_operand.hbm [shape: bf16[128,128], index: 3, kind: input, shape index: {}]   ;;  %s544_s4 = inlined_call_operand.vmem [shape: f32[1,128], index: 4, kind: input, shape index: {}]   ;;  %s545_s5 = inlined_call_operand.hbm [shape: bf16[128,128], index: 5, kind: input, shape index: {}]   ;;  %s546_s6 = inlined_call_operand.vmem [shape: f32[1,128], index: 6, kind: input, shape index: {}]   ;;  %s547_s7 = inlined_call_operand.vmem [shape: bf16[16,128], index: 7, kind: output, shape index: {}]  }
   0x1   :  { %13 = vsyncpa [#allocation5], 0  ;;  %s35_s26 = sshll.u32 %s543_s3, 4  ;;  %s466_s27 = smov [#allocation4]   ;;  %s36_s26 = int_to_ptr.hbm [resolvable:$true] %s35_s26 }
   0x2   :  { %s37_s28 = sshll.u32 %s466_s27, 4  ;;  %s20_s8 = sshll.u32 %s541_s1, 4  ;;  %s38_s28 = int_to_ptr.vmem [resolvable:$true] %s37_s28  ;;  %s21_s8 = int_to_ptr.hbm [resolvable:$true] %s20_s8 }
   0x3   :  { %s467_s9 = smov 64   ;;  %s468_s10 = smov 4  }
   0x4   :  { %43 = dma.hbm_to_vmem [thread:$0]  %s36_s26, 1024, %s38_s28, [#allocation5], %s467_s9, %s467_s9, %s468_s10  }
   0x5   :  { %s469_s11 = smov [#allocation2]   ;;  %s470_s13 = smov 128  }
   0x6   :  { %s22_s12 = sshll.u32 %s469_s11, 4  ;;  %s471_s14 = smov 8   ;;  %s23_s12 = int_to_ptr.vmem [resolvable:$true] %s22_s12 }
   0x7   :  { %28 = dma.hbm_to_vmem [thread:$0]  %s21_s8, 512, %s23_s12, [#allocation3], %s470_s13, %s470_s13, %s471_s14  }
   0x8   :  { %s50_s16 = sshll.u32 %s545_s5, 4  ;;  %s472_s17 = smov [#allocation6]   ;;  %s51_s16 = int_to_ptr.hbm [resolvable:$true] %s50_s16 }
   0x9   :  { %s52_s18 = sshll.u32 %s472_s17, 4  ;;  %s53_s18 = int_to_ptr.vmem [resolvable:$true] %s52_s18 }
   0xa   :  { %58 = dma.hbm_to_vmem [thread:$0]  %s51_s16, 1024, %s53_s18, [#allocation5], %s467_s9, %s467_s9, %s468_s10  }
   0xb   :  { %462 = dma.done.wait [#allocation3], 512  }
   0xc   :  { %463 = vsyncadd [#allocation3], 4294966784 }
   0xd   :  { %464 = dma.done.wait [#allocation5], 2048  }
   0xe   :  { %465 = vsyncadd [#allocation5], 4294965248  ;;  %v78_v0 = vld [vmem:[#allocation2 + $0x18] sm:$0xff]  ;;  %v77_v1 = vld [vmem:[#allocation2 + $0x10] sm:$0xff]  ;;  %vm83_vm0 = vcmask 261120  }
   0xf   :  { %102 = vmatpush.msra.mxu0 %v78_v0  ;;  %v76_v2 = vld [vmem:[#allocation2 + $0x8] sm:$0xff]  ;;  %v366_v3 = vld [vmem:[#allocation4 + $0x38] sm:$0xff]  ;;  %v75_v4 = vld [vmem:[#allocation2] sm:$0xff] }
  0x10   :  { %184 = vmatpush.bf16.msra.mxu1 %v366_v3  ;;  %v365_v5 = vld [vmem:[#allocation4 + $0x30] sm:$0xff]  ;;  %v73_v6 = vld [vmem:[%s540_s0] sm:$0xff]  ;;  %v364_v7 = vld [vmem:[#allocation4 + $0x28] sm:$0xff] }
  0x11   :  { %103 = vmatpush.msra.mxu0 %v77_v1  ;;  %v363_v8 = vld [vmem:[#allocation4 + $0x20] sm:$0xff]  ;;  %v74_v9 = vld [vmem:[%s540_s0 + $0x8] sm:$0xff]  ;;  %v362_v10 = vld [vmem:[#allocation4 + $0x18] sm:$0xff] }
  0x12   :  { %v361_v11 = vld [vmem:[#allocation4 + $0x10] sm:$0xff]  ;;  %v360_v12 = vld [vmem:[#allocation4 + $0x8] sm:$0xff]  ;;  %v359_v13 = vld [vmem:[#allocation4] sm:$0xff] }
  0x13   :  { %104 = vmatpush.msra.mxu0 %v76_v2  ;;  %v374_v14 = vld [vmem:[#allocation6 + $0x38] sm:$0xff]  ;;  %v373_v15 = vld [vmem:[#allocation6 + $0x30] sm:$0xff]  ;;  %v372_v16 = vld [vmem:[#allocation6 + $0x28] sm:$0xff] }
  0x14   :  { %185 = vmatpush.bf16.msra.mxu1 %v365_v5  ;;  %269 = vmatpush.bf16.msra.mxu2 %v374_v14  ;;  %v371_v17 = vld [vmem:[#allocation6 + $0x20] sm:$0xff]  ;;  %v370_v26 = vld [vmem:[#allocation6 + $0x18] sm:$0xff]  ;;  %v369_v27 = vld [vmem:[#allocation6 + $0x10] sm:$0xff] }
  0x15   :  { %105 = vmatpush.msra.mxu0 %v75_v4  ;;  %v387_v19 = vld [vmem:[%s542_s2] ss:$0 sm:$0xff]  ;;  %v368_v28 = vld [vmem:[#allocation6 + $0x8] sm:$0xff] }
  0x16   :  { %293 = vmatmul.msk.f32.vlgmr.msra.gmra.mxu0 %vm83_vm0, %v73_v6  ;;  %v367_v29 = vld [vmem:[#allocation6] sm:$0xff] }
  0x17   :  { %v388_v31 = vld [vmem:[%s544_s4] ss:$0 sm:$0xff] }
  0x18   :  { %186 = vmatpush.bf16.msra.mxu1 %v364_v7  ;;  %270 = vmatpush.bf16.msra.mxu2 %v373_v15  ;;  %v389_v39 = vld [vmem:[%s546_s6] ss:$0 sm:$0xff] }
  0x1c   :  { %187 = vmatpush.bf16.msra.mxu1 %v363_v8  ;;  %271 = vmatpush.bf16.msra.mxu2 %v372_v16 }
  0x1e   :  { %294 = vmatmul.msk.f32.gmra.mxu0 %vm83_vm0, %v74_v9 }
  0x20   :  { %188 = vmatpush.bf16.msra.mxu1 %v362_v10  ;;  %272 = vmatpush.bf16.msra.mxu2 %v371_v17 }
  0x24   :  { %189 = vmatpush.bf16.msra.mxu1 %v361_v11  ;;  %273 = vmatpush.bf16.msra.mxu2 %v370_v26 }
  0x28   :  { %190 = vmatpush.bf16.msra.mxu1 %v360_v12  ;;  %274 = vmatpush.bf16.msra.mxu2 %v369_v27 }
  0x2c   :  { %191 = vmatpush.bf16.msra.mxu1 %v359_v13  ;;  %275 = vmatpush.bf16.msra.mxu2 %v368_v28 }
  0x30   :  { %276 = vmatpush.bf16.msra.mxu2 %v367_v29 }
  0x93   :  { %v107_v18 = vpop.f32.mrf.mxu0 }
  0x94   :  { %v108_v20 = vadd.f32 %v387_v19, %v107_v18 }
  0x96   :  { %v113_v23 = vmax.f32 %v108_v20, 0.0 }
  0x9b   :  { %v110_v21 = vpop.f32.mrf.mxu0 }
  0x9c   :  { %v111_v22 = vadd.f32 %v387_v19, %v110_v21 }
  0x9e   :  { %v114_v24 = vmax.f32 %v111_v22, 0.0 }
  0xa0   :  { %v115_v25 = vpack.c.bf16 %v114_v24, %v113_v23 }
  0xa2   :  { %192 = vmatmul.bf16.vlgmr.msra.gmra.mxu1 %v115_v25 }
 0x11f   :  { %v193_v30 = vpop.f32.mrf.mxu1 }
 0x120   :  { %v194_v32 = vadd.f32 %v388_v31, %v193_v30 }
 0x122   :  { %v198_v35 = vmax.f32 %v194_v32, 0.0 }
 0x127   :  { %v195_v33 = vpop.f32.mrf.mxu1 }
 0x128   :  { %v196_v34 = vadd.f32 %v388_v31, %v195_v33 }
 0x12a   :  { %v199_v36 = vmax.f32 %v196_v34, 0.0 }
 0x12c   :  { %v200_v37 = vpack.c.bf16 %v199_v36, %v198_v35 }
 0x12e   :  { %277 = vmatmul.bf16.vlgmr.msra.gmra.mxu2 %v200_v37 }
 0x1b1   :  { %v278_v38 = vpop.f32.mrf.mxu2 }
 0x1b2   :  { %v279_v41 = vadd.f32 %v389_v39, %v278_v38 }
 0x1b9   :  { %v280_v40 = vpop.f32.mrf.mxu2 }
 0x1ba   :  { %v281_v42 = vadd.f32 %v389_v39, %v280_v40 }
 0x1bc   :  { %v378_v43 = vpack.c.bf16 %v281_v42, %v279_v41 }
 0x1be   :  { %379 = vst [vmem:[%s547_s7] sm:$0xff] %v378_v43  }
 0x1bf   :  { %291 = vsyncpa [#allocation3], 1 }
 0x1c0   :  { %292 = vsyncpa [#allocation5], 1 }

</bundles_post_ra>
